<compile_context>
chip_gen: v7x
topology: tpu7x:2x2x1
jax: 0.10.0
libtpu: 0.0.40
codegen_flags: <defaults>
</compile_context>

<pallas_src>
import jax
import jax.numpy as jnp
from jax.experimental import pallas as pl
from jax.experimental.pallas import tpu as pltpu

_LANE = 128                             # vreg lane width
_TARGET_BLOCK_BYTES = 2 * 1024 * 1024   # ~2 MiB/block; double-buffered in+out
                                        # ~8 MiB VMEM -> safe on v5e/v6e/v7x.
_WIDE_LANE_CANDIDATES = (4096, 2048, 1024, 512, 256, 128)


def _identity_kernel(x_ref, o_ref):
    # TODO(synk): reference forward() is `pass` (abstract base) — no concrete
    # dynamics are specified; the closest well-defined hot path is identity.
    o_ref[...] = x_ref[...]


def _sublane_quantum(dtype):
    """Minimum dense sublane count for this dtype: 8 f32, 16 bf16, 32 int8/fp8."""
    return max(8, 32 // jnp.dtype(dtype).itemsize)


def _round_up(v, m):
    return -(-v // m) * m


def _pallas_copy_2d(x2):
    """Lane-dense, tiled identity copy of a (rows, width) array."""
    rows, width = x2.shape
    itemsize = jnp.dtype(x2.dtype).itemsize
    q = _sublane_quantum(x2.dtype)

    # ~2 MiB blocks, rounded to the dtype's sublane quantum.
    tb = max(q, (_TARGET_BLOCK_BYTES // (width * itemsize)) // q * q)
    tb = min(tb, rows)
    # v7x has two TensorCores and shards a "parallel" grid axis across them:
    # avoid a single-step grid when there is enough work for both cores
    # (on v5e/v6e this only costs one extra ~0.35 us grid step).
    if tb >= rows and rows >= 2 * q:
        tb = min(rows, _round_up(pl.cdiv(rows, 2), q))
    grid = (pl.cdiv(rows, tb),)

    nbytes = rows * width * itemsize
    return pl.pallas_call(
        _identity_kernel,
        out_shape=jax.ShapeDtypeStruct((rows, width), x2.dtype),
        grid=grid,
        in_specs=[pl.BlockSpec((tb, width), lambda i: (i, 0))],
        out_specs=pl.BlockSpec((tb, width), lambda i: (i, 0)),
        compiler_params=pltpu.CompilerParams(
            dimension_semantics=("parallel",)),
        cost_estimate=pl.CostEstimate(
            flops=0, transcendentals=0, bytes_accessed=2 * nbytes),
    )(x2)


@jax.jit
def _pallas_identity(x):
    """Identity pass-through of x via a lane-dense, tiled Pallas copy."""
    orig_shape = x.shape
    n = int(x.size)
    q = _sublane_quantum(x.dtype)

    # Fast path: identity has zero semantic work; skip the kernel when launch
    # overhead would dominate (less than one dense (q, 128) tile of data).
    if n < q * _LANE:
        return x

    # Prefer a wide lane dimension (longer DMA bursts, fewer grid steps) such
    # that the whole array forms a dense (rows, width) view: width | n and
    # q | rows — no padding, every store is a full unmasked vst.
    for width in _WIDE_LANE_CANDIDATES:
        if n % width == 0 and (n // width) % q == 0:
            out2 = _pallas_copy_2d(x.reshape(n // width, width))
            return out2.reshape(orig_shape)

    # Ragged size: copy the (q*128)-aligned bulk through Pallas and the small
    # (< q*128 element) tail with a trivial JAX copy — no pad/slice passes.
    quantum = q * _LANE
    n_bulk = (n // quantum) * quantum
    if n_bulk == 0:
        return x
    xf = x.reshape(-1)
    bulk = _pallas_copy_2d(xf[:n_bulk].reshape(n_bulk // _LANE, _LANE))
    out = jnp.concatenate([bulk.reshape(-1), xf[n_bulk:]])
    return out.reshape(orig_shape)


class PhysicalModel:
    """JAX port of code/simulators/GenericSimulator.PhysicalModel."""

    def __init__(self, param_values, trainable_param):
        self._nb_parameters = len(trainable_param)
        self._X_dim = -1
        self.incomplete_param_dim_textual = []
        self.full_param_dim_textual = []
        self.missing_param_dim_textual = []
        self.trainable_param = trainable_param
        for p in param_values.keys():
            if p in trainable_param:
                self.incomplete_param_dim_textual.append(p)
            else:
                self.missing_param_dim_textual.append(p)
            self.full_param_dim_textual.append(p)

    def forward(self, t, x):
        # Reference body is `pass` (returns None).  We deliberately return x
        # (identity dynamics) so the hot path exercises a real Pallas kernel;
        # t is accepted but unused, matching the reference.
        del t
        return _pallas_identity(x)

    def parameterized_forward(self, t, x, **parameters):
        if len(set(parameters.keys()) - set(self.trainable_param)) != 0:
            raise Exception(
                'Parameterized forward physical arguments does not match the '
                'simulator specification. Simulator: {} - kwargs: {}'.format(
                    self.trainable_param, parameters.keys()))
        del t
        return _pallas_identity(x)

    def get_x_labels(self):
        return ['$x_%d$' for i in range(self._X_dim)]

    def get_name(self):
        return 'Generic Simulator'


if __name__ == "__main__":
    key = jax.random.PRNGKey(0)
    param_values = {"alpha": 1.0, "beta": 0.5, "gamma": 2.0}
    trainable_param = ["alpha", "beta"]
    model = PhysicalModel(param_values, trainable_param)

    k1, k2, k3, k4 = jax.random.split(key, 4)
    t = jnp.float32(0.25)

    # Primary input (batch=2, channels=4, spatial=16x16): dense kernel path.
    x = jax.random.normal(k1, (2, 4, 16, 16), dtype=jnp.float32)
    out = jax.block_until_ready(model.forward(t, x))
    assert out.shape == x.shape and out.dtype == x.dtype
    assert bool(jnp.allclose(out, x))

    # Larger batch: wide 4096-lane view + 2-step "parallel" grid (both v7x TCs).
    x_big = jax.random.normal(k2, (64, 4, 16, 16), dtype=jnp.float32)
    out_big = jax.block_until_ready(model.forward(t, x_big))
    assert bool(jnp.allclose(out_big, x_big))

    # Ragged size (not a multiple of 128): aligned bulk via Pallas + JAX tail.
    x_rag = jax.random.normal(k3, (2, 1000), dtype=jnp.float32)
    out_rag = jax.block_until_ready(model.forward(t, x_rag))
    assert bool(jnp.allclose(out_rag, x_rag))

    # bf16 exercises the dtype-aware (16, 128) sublane quantum.
    x_bf = jax.random.normal(k4, (32, 128), dtype=jnp.bfloat16)
    out_bf = jax.block_until_ready(model.forward(t, x_bf))
    assert bool(jnp.array_equal(out_bf, x_bf))

    # Tiny input takes the zero-copy fast path.
    x_small = jax.random.normal(k1, (2, 32), dtype=jnp.float32)
    out_small = jax.block_until_ready(model.forward(t, x_small))
    assert bool(jnp.allclose(out_small, x_small))

    # Identity must hold for non-finite t (t is unused, as in the reference).
    out_nan = jax.block_until_ready(model.forward(jnp.float32(jnp.nan), x))
    assert bool(jnp.allclose(out_nan, x))

    # parameterized_forward: kwarg validation + same pass-through kernel.
    out_p = jax.block_until_ready(
        model.parameterized_forward(t, x, alpha=1.0, beta=0.5))
    assert bool(jnp.allclose(out_p, x))
    try:
        model.parameterized_forward(t, x, delta=3.0)
        raise AssertionError("expected kwarg-validation Exception")
    except AssertionError:
        raise
    except Exception as e:
        assert "does not match the simulator specification" in str(e)

    print("KERNEL_OK")
</pallas_src>

<mosaic_0001>
module attributes {stable_mosaic.version = 11 : i64} {
  func.func @_identity_kernel(%arg0: i32, %arg1: memref<8x256xf32, #tpu.memory_space<vmem>>, %arg2: memref<8x256xf32, #tpu.memory_space<vmem>>) attributes {dimension_semantics = [#tpu.dimension_semantics<parallel>], iteration_bounds = array<i64: 1>, scalar_prefetch = 0 : i64, scratch_operands = 0 : i64, tpu.core_type = #tpu.core_type<tc>, window_params = [{transform_indices = @transform_0, window_bounds = array<i64: 8, 256>}, {transform_indices = @transform_1, window_bounds = array<i64: 8, 256>}]} {
    %c0 = arith.constant 0 : index
    %c0_0 = arith.constant 0 : index
    %0 = vector.load %arg1[%c0, %c0_0] : memref<8x256xf32, #tpu.memory_space<vmem>>, vector<8x256xf32>
    %c0_1 = arith.constant 0 : index
    %c0_2 = arith.constant 0 : index
    %1 = vector.load %arg2[%c0_1, %c0_2] : memref<8x256xf32, #tpu.memory_space<vmem>>, vector<8x256xf32>
    tpu.vector_store %arg2[%c0_1, %c0_2], %0 {strides = array<i32>} : memref<8x256xf32, #tpu.memory_space<vmem>>, vector<8x256xf32>,
    return
  }
  func.func @transform_0(%arg0: i32) -> (i32, i32) {
    %c0_i32 = arith.constant 0 : i32
    %c0_i32_0 = arith.constant 0 : i32
    return %arg0, %c0_i32 : i32, i32
  }
  func.func @transform_1(%arg0: i32) -> (i32, i32) {
    %c0_i32 = arith.constant 0 : i32
    %c0_i32_0 = arith.constant 0 : i32
    return %arg0, %c0_i32 : i32, i32
  }
}

</mosaic_0001>

<bundles_post_ra>
// kernel: _pallas_identity.1
= control target key start
LH: loop header
LB: loop body
LE: loop exit
PB: predicated region body
PF: predicated region fallthrough
CT: control target
= control target key end

     0   :  { %s38_s0 = inlined_call_operand.vmem [shape: f32[8,256], index: 0, kind: input, shape index: {}]   ;;  %s39_s1 = inlined_call_operand.vmem [shape: f32[8,256], index: 1, kind: output, shape index: {}]  }
   0x1   :  { %v8_v0 = vld [vmem:[%s38_s0] sm:$0xff]  ;;  %v9_v1 = vld [vmem:[%s38_s0 + $0x8] sm:$0xff] }
   0x2   :  { %10 = vst [vmem:[%s39_s1] sm:$0xff] %v8_v0  ;;  %11 = vst [vmem:[%s39_s1 + $0x8] sm:$0xff] %v9_v1 }

</bundles_post_ra>
